<compile_context>
chip_gen: v5e
topology: v5e:2x2
jax: 0.10.0
libtpu: 0.0.40
codegen_flags: <defaults>
</compile_context>

<pallas_src>
import functools
import math

import jax
import jax.numpy as jnp
from jax import lax
from jax.experimental import pallas as pl
from jax.experimental.pallas import tpu as pltpu


def _round_up(x, m):
    return (x + m - 1) // m * m


def _sublane_multiple(dtype):
    # Packed sublane multiple: 8 for 4-byte, 16 for 2-byte, 32 for 1-byte.
    itemsize = jnp.dtype(dtype).itemsize
    return max(8, 32 // itemsize)


def _rmsnorm_kernel(x_ref, g_ref, o_ref, *, scale):
    xb = x_ref[...].astype(jnp.float32)                           # (tm, D)
    ss = jnp.sum(xb * xb, axis=-1, keepdims=True)
    # F.normalize: x / max(||x||, 1e-12)  ==  x * rsqrt(max(ss, 1e-24))
    inv = lax.rsqrt(jnp.maximum(ss, 1e-24))
    # Fold sqrt(D) and the (+1) into a single per-feature weight (1, D).
    w = (g_ref[...].astype(jnp.float32) + 1.0) * scale
    o_ref[...] = (xb * inv * w).astype(o_ref.dtype)


def rmsnorm(x, gamma, *,
            target_step_bytes=4 * 1024 * 1024,
            vmem_budget_bytes=24 * 1024 * 1024,
            vmem_limit_bytes=40 * 1024 * 1024):
    """RMSNorm forward: F.normalize(x, -1) * sqrt(D) * (gamma + 1)."""
    orig_shape = x.shape
    D = orig_shape[-1]
    M = math.prod(orig_shape[:-1]) if len(orig_shape) > 1 else 1
    xf = x.reshape(M, D)
    g2 = gamma.reshape(1, D)

    in_item = jnp.dtype(x.dtype).itemsize
    out_item = in_item                      # output keeps the input dtype
    sub = _sublane_multiple(x.dtype)

    # (1) Target ~4 MiB of input per grid step (amortize per-step overhead).
    tm_target = max(sub, (target_step_bytes // max(D * in_item, 1)) // sub * sub)

    # (2) VMEM cap: 2x double-buffered (in + out) tiles plus ~2 f32 temporaries
    #     per row inside the kernel body.  Dtype-aware.
    per_row_bytes = (2 * (in_item + out_item) + 8) * D
    tm_vmem = max(sub, (vmem_budget_bytes // per_row_bytes) // sub * sub)

    # (3) Guarantee >= 2 grid steps so v7x's two TensorCores both get work.
    tm_split = max(sub, _round_up(-(-M // 2), sub))

    tm = min(tm_target, tm_vmem, tm_split)
    grid = (pl.cdiv(M, tm),)                # ragged last block handled by Pallas

    kernel = functools.partial(_rmsnorm_kernel, scale=float(D) ** 0.5)

    out = pl.pallas_call(
        kernel,
        out_shape=jax.ShapeDtypeStruct((M, D), x.dtype),
        grid=grid,
        in_specs=[
            pl.BlockSpec((tm, D), lambda i: (i, 0)),
            pl.BlockSpec((1, D), lambda i: (0, 0)),   # gamma stays resident
        ],
        out_specs=pl.BlockSpec((tm, D), lambda i: (i, 0)),
        compiler_params=pltpu.CompilerParams(
            dimension_semantics=("parallel",),
            vmem_limit_bytes=vmem_limit_bytes),
    )(xf, g2)

    return out.reshape(orig_shape)


# ---------------------------------------------------------------------------
# Pure-JAX reference for the correctness check
# ---------------------------------------------------------------------------

def rmsnorm_ref(x, gamma):
    x32 = x.astype(jnp.float32)
    nrm = jnp.maximum(jnp.sqrt(jnp.sum(x32 * x32, axis=-1, keepdims=True)),
                      1e-12)
    y = x32 / nrm * (x.shape[-1] ** 0.5) * (gamma.astype(jnp.float32) + 1.0)
    return y.astype(x.dtype)


# ---------------------------------------------------------------------------

if __name__ == "__main__":
    key = jax.random.PRNGKey(0)
    k1, k2, k3, k4, k5 = jax.random.split(key, 5)

    # Shapes consistent with use inside minGRULM: x is (batch, seq, dim).
    B, S, D = 2, 8, 32
    x = jax.random.normal(k1, (B, S, D), jnp.float32)
    gamma = jnp.zeros((D,), jnp.float32)          # module init: zeros(dim)

    out = jax.block_until_ready(rmsnorm(x, gamma))
    ref = rmsnorm_ref(x, gamma)
    assert out.shape == x.shape
    assert bool(jnp.all(jnp.isfinite(out)))
    assert bool(jnp.allclose(out, ref, atol=1e-5, rtol=1e-5))

    # Non-trivial gamma and a row count (3*5=15) that is not a multiple of the
    # tile -> exercises the ragged final block.
    x2 = jax.random.normal(k2, (3, 5, D), jnp.float32)
    gamma2 = 0.1 * jax.random.normal(k3, (D,), jnp.float32)
    out2 = jax.block_until_ready(rmsnorm(x2, gamma2))
    assert bool(jnp.allclose(out2, rmsnorm_ref(x2, gamma2),
                             atol=1e-5, rtol=1e-5))

    # Larger, lane-dense case exercising a multi-step grid with big row tiles.
    x3 = jax.random.normal(k4, (4, 128, 256), jnp.float32)
    gamma3 = jnp.zeros((256,), jnp.float32)
    out3 = jax.block_until_ready(rmsnorm(x3, gamma3))
    assert bool(jnp.allclose(out3, rmsnorm_ref(x3, gamma3),
                             atol=1e-5, rtol=1e-5))

    # bf16 case: exercises the dtype-aware sublane multiple (16) and itemsize
    # accounting.  Loose tolerance for bf16 rounding.
    x4 = jax.random.normal(k5, (2, 64, 128), jnp.float32).astype(jnp.bfloat16)
    gamma4 = jnp.zeros((128,), jnp.float32)
    out4 = jax.block_until_ready(rmsnorm(x4, gamma4))
    ref4 = rmsnorm_ref(x4, gamma4)
    assert out4.dtype == jnp.bfloat16
    assert bool(jnp.allclose(out4.astype(jnp.float32),
                             ref4.astype(jnp.float32),
                             atol=3e-2, rtol=3e-2))

    print("KERNEL_OK")
</pallas_src>

<mosaic_0001>
module attributes {stable_mosaic.version = 11 : i64} {
  func.func @_rmsnorm_kernel(%arg0: i32, %arg1: memref<8x32xf32, #tpu.memory_space<vmem>>, %arg2: memref<1x32xf32, #tpu.memory_space<vmem>>, %arg3: memref<8x32xf32, #tpu.memory_space<vmem>>) attributes {dimension_semantics = [#tpu.dimension_semantics<parallel>], iteration_bounds = array<i64: 2>, scalar_prefetch = 0 : i64, scratch_operands = 0 : i64, tpu.core_type = #tpu.core_type<tc>, window_params = [{transform_indices = @transform_0, window_bounds = array<i64: 8, 32>}, {pipeline_mode = #tpu.pipeline_mode<synchronous>, transform_indices = @transform_1, window_bounds = array<i64: 1, 32>}, {transform_indices = @transform_2, window_bounds = array<i64: 8, 32>}]} {
    %c0 = arith.constant 0 : index
    %c0_0 = arith.constant 0 : index
    %0 = vector.load %arg1[%c0, %c0_0] : memref<8x32xf32, #tpu.memory_space<vmem>>, vector<8x32xf32>
    %1 = arith.mulf %0, %0 : vector<8x32xf32>
    %cst = arith.constant dense<0.000000e+00> : vector<8xf32>
    %2 = vector.multi_reduction <add>, %1, %cst [1] : vector<8x32xf32> to vector<8xf32>
    %3 = vector.shape_cast %2 : vector<8xf32> to vector<8x1xf32>
    %cst_1 = arith.constant 1.000000e-24 : f32
    %4 = vector.broadcast %cst_1 : f32 to vector<8x1xf32>
    %5 = arith.maximumf %3, %4 : vector<8x1xf32>
    %6 = math.rsqrt %5 : vector<8x1xf32>
    %c0_2 = arith.constant 0 : index
    %c0_3 = arith.constant 0 : index
    %7 = vector.load %arg2[%c0_2, %c0_3] : memref<1x32xf32, #tpu.memory_space<vmem>>, vector<1x32xf32>
    %cst_4 = arith.constant 1.000000e+00 : f32
    %8 = vector.broadcast %cst_4 : f32 to vector<1x32xf32>
    %9 = arith.addf %7, %8 : vector<1x32xf32>
    %cst_5 = arith.constant 5.65685415 : f32
    %10 = vector.broadcast %cst_5 : f32 to vector<1x32xf32>
    %11 = arith.mulf %9, %10 : vector<1x32xf32>
    %12 = vector.broadcast %6 : vector<8x1xf32> to vector<8x32xf32>
    %13 = arith.mulf %0, %12 : vector<8x32xf32>
    %14 = vector.broadcast %11 : vector<1x32xf32> to vector<8x32xf32>
    %15 = arith.mulf %13, %14 : vector<8x32xf32>
    %c0_6 = arith.constant 0 : index
    %c0_7 = arith.constant 0 : index
    %16 = vector.load %arg3[%c0_6, %c0_7] : memref<8x32xf32, #tpu.memory_space<vmem>>, vector<8x32xf32>
    tpu.vector_store %arg3[%c0_6, %c0_7], %15 {strides = array<i32>} : memref<8x32xf32, #tpu.memory_space<vmem>>, vector<8x32xf32>,
    return
  }
  func.func @transform_0(%arg0: i32) -> (i32, i32) {
    %c0_i32 = arith.constant 0 : i32
    %c0_i32_0 = arith.constant 0 : i32
    return %arg0, %c0_i32 : i32, i32
  }
  func.func @transform_1(%arg0: i32) -> (i32, i32) {
    %c0_i32 = arith.constant 0 : i32
    %c0_i32_0 = arith.constant 0 : i32
    %c0_i32_1 = arith.constant 0 : i32
    return %c0_i32, %c0_i32_0 : i32, i32
  }
  func.func @transform_2(%arg0: i32) -> (i32, i32) {
    %c0_i32 = arith.constant 0 : i32
    %c0_i32_0 = arith.constant 0 : i32
    return %arg0, %c0_i32 : i32, i32
  }
}

</mosaic_0001>

<bundles_post_ra>
// kernel: tpu_custom_call.1
= control target key start
LH: loop header
LB: loop body
LE: loop exit
PB: predicated region body
PF: predicated region fallthrough
CT: control target
= control target key end

     0   :  { %7 = vsyncpa [#allocation3], 0  ;;  %s663_s0 = inlined_call_operand.hbm [shape: f32[16,32], index: 0, kind: input, shape index: {}]   ;;  %s664_s1 = inlined_call_operand.hbm [shape: f32[1,32], index: 1, kind: input, shape index: {}]   ;;  %s665_s2 = inlined_call_operand.hbm [shape: f32[16,32], index: 2, kind: output, shape index: {}]  }
   0x1   :  { %9 = vsyncpa [#allocation3 + $0x1], 0 }
   0x2   :  { %10 = vsyncpa [#allocation6], 0 }
   0x3   :  { %11 = vsyncpa [#allocation4], 0 }
   0x4   :  { %13 = vsyncpa [#allocation4 + $0x1], 0  ;;  %s519_s9 = smov 0   ;;  %s521_s10 = smov 0  }
   0x5   :  { %s523_s11 = smov 0   ;;  %s525_s12 = smov 0  }
   0x6 LB: > { %s540_s13 = sadd.s32 4294967295, %s501_s12   ;;  %s298_s14 = sadd.s32 4294967294, %s501_s12   ;;  %s501_s12 = sphi %s525_s12, %s675_s12   ;;  %s497_s11 = sphi %s523_s11, %s674_s11   ;;  %s493_s10 = sphi %s521_s10, %s673_s10   ;;  %s489_s9 = sphi %s519_s9, %s672_s9  }
   0x7   : > { %p39_p0 = scmp.ne.s32.totalorder %s493_s10, %s489_s9  ;;  %p40_p1 = scmp.eq.s32.totalorder %s540_s13, 0 }
   0x8   : > { %p84_p2 = scmp.eq.s32.totalorder %s540_s13, 1  ;;  %p90_p3 = scmp.eq.s32.totalorder %s298_s14, 1 }
   0x9   : > { %p549_p4 = por %p40_p1, %p39_p0  ;;  %p299_p5 = scmp.ge.s32.totalorder %s501_s12, 1 }
   0xa   : > { %p554_p6 = por %p90_p3, %p39_p0  ;;  %p97_p7 = scmp.lt.s32.totalorder %s501_s12, 3 }
   0xb   : > { %s109_s19 = sshll.u32 %s664_s1, 4  ;;  %s503_s21 = smov [#allocation5]   ;;  %s110_s19 = int_to_ptr.hbm [resolvable:$true] %s109_s19 }
   0xc   : > { %p562_p8 = pnand %p299_p5, %p97_p7  ;;  %s111_s22 = sshll.u32 %s503_s21, 4  ;;  %s112_s22 = int_to_ptr.vmem [resolvable:$true] %s111_s22 }
   0xd   : > { %s572_s23 = sadd.s32 1, %s501_s12   ;;  %s26_s24 = sadd.s32 1, %s497_s11 }
   0xe   : > { %p320_p10 = pneg %p562_p8  ;;  %s23_s25 = ssub.s32 %s501_s12, %s572_s23 }
   0xf   : > { %p24_p12 = scmp.eq.s32.totalorder %s23_s25, 0  ;;  %p33_p13 = scmp.ne.s32.totalorder %s497_s11, %s493_s10 }
  0x10   : > { %p321_p11 = pnand %p320_p10, %p40_p1  ;;  %p34_p0 = scmp.eq.s32.totalorder %s501_s12, 0 }
  0x11   : > { %s581_s26 = scalar_select %p24_p12, %s497_s11, %s26_s24  }
  0x12   : > { %323 = dma.hbm_to_vmem [thread:$0]  (!%p321_p11), %s110_s19, 16, %s112_s22, [#allocation6]  }
  0x13   : > { %p585_p3 = por %p84_p2, %p33_p13  ;;  %p333_p5 = scmp.lt.s32.totalorder %s501_s12, 2 }
  0x14   : > { %s122_s28 = sand.u32 1, %s497_s11   ;;  %s303_s29 = sshll.u32 %s501_s12, 3 }
  0x15   : > { %p35_p7 = por %p34_p0, %p33_p13  ;;  %s302_s30 = sshll.u32 %s122_s28, 3 }
  0x16   : > { %s130_s5 = scalar_lea.hbm %s663_s0, %s303_s29  ;;  %s126_s7 = scalar_lea.vmem [#allocation2], %s302_s30 }
  0x17   : > { %s132_s6 = sshll.u32 %s130_s5, 4  ;;  %s134_s8 = sshll.u32 %s126_s7, 4  ;;  %s133_s6 = int_to_ptr.hbm [resolvable:$true] %s132_s6  ;;  %s135_s8 = int_to_ptr.vmem [resolvable:$true] %s134_s8 }
  0x18   : > { %p595_p10 = pnand %p333_p5, %p35_p7  ;;  %s123_s17 = scalar_lea.sflag [#allocation3], %s122_s28 }
  0x19   : > { %s401_s18 = sshra.s32 %s133_s6, 4  ;;  %s408_s24 = scalar_lea.hbm %s663_s0, 16  ;;  %s402_s18 = int_to_ptr.hbm [resolvable:$true] %s401_s18 }
  0x1a   : > { %s403_s19 = scalar_lea.hbm %s402_s18, 8  ;;  %p405_p11 = pneg %p595_p10 }
  0x1b   : > { %p404_p2 = scmp.ne.s32.totalorder %s402_s18, %s403_s19  ;;  %p409_p0 = scmp.lt.s32.totalorder %s402_s18, %s663_s0 }
  0x1c   : > { %p410_p5 = scmp.lt.s32.totalorder %s408_s24, %s403_s19 }
  0x1d   : > { %p406_p12 = pnand %p405_p11, %p404_p2 }
  0x1e   : > { %p411_p7 = por %p410_p5, %p409_p0 }
  0x1f   : > { %p407_p13 = pneg %p406_p12 }
  0x21   : > { %p412_p9 = pnand %p411_p7, %p407_p13 }
  0x23   : > { %415 = shalt.err (!%p412_p9)
}
  0x24   : > { %327 = dma.hbm_to_vmem [thread:$0]  (!%p595_p10), %s133_s6, 128, %s135_s8, %s123_s17  }
  0x25   : > { %143 = sbr.rel (%p562_p8) target bundleno = 192 (0xc0), region = 28  ;;  %s612_s28 = sand.u32 (!%p562_p8), 1, %s493_s10  }
  0x26   : > { %s305_s30 = sshll.u32 (!%p562_p8), %s612_s28, 3  ;;  %s146_s3 = scalar_lea.sflag (!%p562_p8), [#allocation3], %s612_s28 }
  0x27   : > { %s149_s4 = scalar_lea.vmem (!%p562_p8), [#allocation2], %s305_s30 }
  0x2a   : > { %476 = dma.done.wait (%p549_p4), %s146_s3, 128  }
  0x2b   : > { %478 = vsyncadd (%p549_p4), %s146_s3, 4294967168 }
  0x2c   : > { %480 = dma.done.wait (%p40_p1), [#allocation6], 16  }
  0x2d   : > { %482 = vsyncadd (%p40_p1), [#allocation6], 4294967280  ;;  %v176_v0 = vld [vmem:[%s149_s4] sm:$0xff]  ;;  %vm178_vm0 = vcmask 261120   ;;  %v193_v5 = vld [vmem:[#allocation5] sm:$0x1] }
  0x2e   : > { %v177_v1 = vmul.f32 %v176_v0, %v176_v0  ;;  %v194_v8 = vadd.f32 1.0, %v193_v5  ;;  %s309_s15 = sshll.u32 %s540_s13, 3  ;;  %s175_s7 = scalar_lea.vmem [#allocation7], %s305_s30 }
  0x2f   : > { %s213_s6 = scalar_lea.hbm %s665_s2, %s309_s15  ;;  %s215_s8 = sshll.u32 %s175_s7, 4  ;;  %s216_s8 = int_to_ptr.vmem [resolvable:$true] %s215_s8 }
  0x30   : > { %v179_v2 = vsel %vm178_vm0, %v177_v1, 0.0  ;;  %v195_v11 = vmul.f32 5.656854, %v194_v8  ;;  %s217_s14 = sshll.u32 %s213_s6, 4  ;;  %s203_s13 = scalar_lea.sflag [#allocation4], %s612_s28  ;;  %s218_s14 = int_to_ptr.hbm [resolvable:$true] %s217_s14 }
  0x31   : > { %180 = vadd.xlane.f32.xlu0 %v179_v2  ;;  %s445_s17 = sshra.s32 %s218_s14, 4  ;;  %s451_s22 = scalar_lea.hbm %s665_s2, 16  ;;  %s446_s17 = int_to_ptr.hbm [resolvable:$true] %s445_s17 }
  0x32   : > { %v198_v14 = vperm.slane %v195_v11, 0  ;;  %s447_s18 = scalar_lea.hbm %s446_s17, 8  ;;  %p452_p9 = scmp.lt.s32.totalorder %s446_s17, %s665_s2 }
  0x33   : > { %p448_p1 = scmp.ne.s32.totalorder %s446_s17, %s447_s18  ;;  %p453_p10 = scmp.lt.s32.totalorder %s451_s22, %s447_s18 }
  0x35   : > { %p449_p4 = pnand %p448_p1, %p585_p3  ;;  %p454_p2 = por %p453_p10, %p452_p9 }
  0x37   : > { %p450_p8 = pneg %p449_p4 }
  0x39   : > { %p455_p11 = pnand %p454_p2, %p450_p8 }
  0xa4   : > { %v181_v3 = vpop.xlane.xlu0 %180 }
  0xa5   : > { %v182_v4 = vmax.f32 %v181_v3, 1e-24 }
  0xa7   : > { %369 = vrsqrt.f32 %v182_v4  ;;  %vm189_vm2 = vweird.f32 %v182_v4 }
  0xad   : > { %v370_v6 = vpop.eup %369 }
  0xae   : > { %v184_v7 = vmul.f32 %v370_v6, %v182_v4  ;;  %vm190_vm1 = vweird.f32 %v370_v6 }
  0xaf   : > { %vm191_vm3 = vmor %vm189_vm2, %vm190_vm1 }
  0xb0   : > { %v185_v9 = vmul.f32 %v370_v6, %v184_v7 }
  0xb2   : > { %v186_v10 = vmul.f32 0.5, %v185_v9 }
  0xb4   : > { %v187_v12 = vsub.f32 1.5, %v186_v10 }
  0xb6   : > { %v188_v13 = vmul.f32 %v370_v6, %v187_v12 }
  0xb8   : > { %v192_v15 = vsel %vm191_vm3, %v370_v6, %v188_v13 }
  0xb9   : > { %v196_v16 = vmul.f32 %v192_v15, %v176_v0 }
  0xbb   : > { %v200_v17 = vmul.f32 %v198_v14, %v196_v16 }
  0xbd   : > { %201 = vst.msk [vmem:[%s175_s7] sm:$0xff] %vm178_vm0, %v200_v17 }
  0xbe   : > { %458 = shalt.err (!%p455_p11)
}
  0xbf   : > { %318 = dma.vmem_to_hbm [thread:$0]  (%p585_p3), %s216_s8, 128, %s218_s14, %s203_s13  }
  0xc0 PF: > { %s229_s29 = sand.u32 1, %s489_s9   ;;  %p671_p12 = scmp.ge.s32.totalorder %s501_s12, 2 }
  0xc1   : > { %s230_s28 = scalar_lea.sflag [#allocation4], %s229_s29 }
  0xc2   : > { %p329_p13 = pnand %p671_p12, %p554_p6 }
  0xc4   : > { %p330_p0 = pneg %p329_p13 }
  0xc6   : > { %484 = dma.done.wait (%p330_p0), %s230_s28, 128  }
  0xc7   : > { %486 = vsyncadd (%p330_p0), %s230_s28, 4294967168  ;;  %p16_p5 = scmp.ge.s32.totalorder %s572_s23, 4   ;;  %s672_s9 = smov %s493_s10 }
  0xc8   : > { %s673_s10 = smov %s497_s11  ;;  %s674_s11 = smov %s581_s26 }
  0xc9   : > { %s675_s12 = smov %s572_s23  ;;  %18 = sbr.rel (!%p16_p5) target bundleno = 6 (0x6), region = 77 }
  0xce   :  { %236 = vsyncpa [#allocation3], 1 }
  0xcf   :  { %238 = vsyncpa [#allocation3 + $0x1], 1 }
  0xd0   :  { %239 = vsyncpa [#allocation6], 1 }
  0xd1   :  { %240 = vsyncpa [#allocation4], 1 }
  0xd2   :  { %242 = vsyncpa [#allocation4 + $0x1], 1 }

</bundles_post_ra>
